<compile_context>
chip_gen: v7x
topology: tpu7x:2x2x1
jax: 0.10.0
libtpu: 0.0.40
codegen_flags: <defaults>
</compile_context>

<pallas_src>
import functools

import jax
import jax.numpy as jnp
from jax.experimental import pallas as pl
from jax.experimental.pallas import tpu as pltpu

BN_EPS = 1e-5


def _fused_encoder_kernel(num_layers, x_ref, *refs):
    """refs = (w_0, gamma_0, beta_0, ..., w_{L-1}, gamma_{L-1}, beta_{L-1}, o_ref)."""
    o_ref = refs[-1]
    h = x_ref[...].astype(jnp.float32)                      # (N, F_in)
    inv_n = 1.0 / h.shape[0]

    for i in range(num_layers):                             # static unroll
        w = refs[3 * i][...]                                # (F_in, F_out) bf16
        gamma = refs[3 * i + 1][...].astype(jnp.float32)    # (1, F_out)
        beta = refs[3 * i + 2][...].astype(jnp.float32)     # (1, F_out)

        # MXU matmul, bf16 inputs, f32 accumulation.
        # Linear bias is omitted: it cancels in the BN mean subtraction.
        z = jnp.dot(h.astype(w.dtype), w, preferred_element_type=jnp.float32)

        # One-pass BN stats folded into a single per-feature scale/shift.
        mean = jnp.sum(z, axis=0, keepdims=True) * inv_n            # (1, F_out)
        ex2 = jnp.sum(z * z, axis=0, keepdims=True) * inv_n         # (1, F_out)
        var = ex2 - mean * mean                                     # biased var
        scale = gamma * jax.lax.rsqrt(var + BN_EPS)                 # EUP rsqrt
        shift = beta - mean * scale
        h = jnp.maximum(z * scale + shift, 0.0)                     # BN + ReLU

    o_ref[...] = h.astype(o_ref.dtype)


def fc_encoder_fused(x, params):
    """Whole encoder in one pallas_call. params: list of (w_bf16, gamma, beta)."""
    n = x.shape[0]
    f_out = params[-1][0].shape[1]
    flat = []
    for (w, gamma, beta) in params:
        flat += [w, gamma, beta]
    kernel = functools.partial(_fused_encoder_kernel, len(params))
    vmem = pl.BlockSpec(memory_space=pltpu.VMEM)
    return pl.pallas_call(
        kernel,
        out_shape=jax.ShapeDtypeStruct((n, f_out), jnp.float32),
        in_specs=[vmem] * (1 + len(flat)),
        out_specs=vmem,
    )(x, *flat)


@jax.jit
def fc_encoder_forward(x, params):
    return fc_encoder_fused(x, params)


def init_fc_encoder_params(key, in_features, hidden_dims):
    """Mirror the PyTorch module's layer shapes.

    Returns:
      params:     kernel params  (w_bf16 (F_in,F_out), gamma (1,F), beta (1,F))
      ref_params: reference params incl. the Linear bias (proves cancellation).
    """
    params, ref_params = [], []
    in_dim = in_features
    for dim in hidden_dims:
        key, kw, kb = jax.random.split(key, 3)
        bound = float(in_dim) ** -0.5
        # Linear weight stored pre-transposed: (in_dim, dim).
        w = jax.random.uniform(kw, (in_dim, dim), jnp.float32, -bound, bound)
        b = jax.random.uniform(kb, (dim,), jnp.float32, -bound, bound)
        w_bf16 = w.astype(jnp.bfloat16)
        gamma = jnp.ones((1, dim), jnp.float32)   # BatchNorm1d default weight
        beta = jnp.zeros((1, dim), jnp.float32)   # BatchNorm1d default bias
        params.append((w_bf16, gamma, beta))
        ref_params.append((w_bf16, b, gamma, beta))
        in_dim = dim
    return params, ref_params


def fc_encoder_reference(x, ref_params):
    """Pure-JAX reference with the *original* semantics (bias + two-pass BN)."""
    h = x
    for (w, b, gamma, beta) in ref_params:
        z = jnp.dot(h.astype(w.dtype), w, preferred_element_type=jnp.float32) + b
        mean = jnp.mean(z, axis=0, keepdims=True)
        var = jnp.mean((z - mean) ** 2, axis=0, keepdims=True)
        h = jnp.maximum((z - mean) * jax.lax.rsqrt(var + BN_EPS) * gamma + beta, 0.0)
    return h


if __name__ == "__main__":
    key = jax.random.PRNGKey(0)
    batch = 8
    in_features = 32
    hidden_dims = [128, 256, 256, 512]  # module default

    kx, kp = jax.random.split(key)
    x = jax.random.normal(kx, (batch, in_features), jnp.float32)
    params, ref_params = init_fc_encoder_params(kp, in_features, hidden_dims)

    out = fc_encoder_forward(x, params)
    out = jax.block_until_ready(out)
    assert out.shape == (batch, hidden_dims[-1]), out.shape

    # Reference includes the Linear bias and two-pass variance; tolerance is
    # relaxed slightly for the bf16 matmul path + one-pass variance in-kernel.
    ref = fc_encoder_reference(x, ref_params)
    assert jnp.allclose(out, ref, atol=1e-2, rtol=1e-2), float(
        jnp.max(jnp.abs(out - ref)))

    print("KERNEL_OK")
</pallas_src>

<mosaic_0001>
module attributes {stable_mosaic.version = 11 : i64} {
  func.func @_fused_encoder_kernel(%arg0: memref<8x32xf32, #tpu.memory_space<vmem>>, %arg1: memref<32x128xbf16, #tpu.memory_space<vmem>>, %arg2: memref<1x128xf32, #tpu.memory_space<vmem>>, %arg3: memref<1x128xf32, #tpu.memory_space<vmem>>, %arg4: memref<128x256xbf16, #tpu.memory_space<vmem>>, %arg5: memref<1x256xf32, #tpu.memory_space<vmem>>, %arg6: memref<1x256xf32, #tpu.memory_space<vmem>>, %arg7: memref<256x256xbf16, #tpu.memory_space<vmem>>, %arg8: memref<1x256xf32, #tpu.memory_space<vmem>>, %arg9: memref<1x256xf32, #tpu.memory_space<vmem>>, %arg10: memref<256x512xbf16, #tpu.memory_space<vmem>>, %arg11: memref<1x512xf32, #tpu.memory_space<vmem>>, %arg12: memref<1x512xf32, #tpu.memory_space<vmem>>, %arg13: memref<8x512xf32, #tpu.memory_space<vmem>>) attributes {dimension_semantics = [], scalar_prefetch = 0 : i64, scratch_operands = 0 : i64, tpu.core_type = #tpu.core_type<tc>} {
    %c0 = arith.constant 0 : index
    %c0_0 = arith.constant 0 : index
    %0 = vector.load %arg0[%c0, %c0_0] : memref<8x32xf32, #tpu.memory_space<vmem>>, vector<8x32xf32>
    %c0_1 = arith.constant 0 : index
    %c0_2 = arith.constant 0 : index
    %1 = vector.load %arg1[%c0_1, %c0_2] : memref<32x128xbf16, #tpu.memory_space<vmem>>, vector<32x128xbf16>
    %c0_3 = arith.constant 0 : index
    %c0_4 = arith.constant 0 : index
    %2 = vector.load %arg2[%c0_3, %c0_4] : memref<1x128xf32, #tpu.memory_space<vmem>>, vector<1x128xf32>
    %c0_5 = arith.constant 0 : index
    %c0_6 = arith.constant 0 : index
    %3 = vector.load %arg3[%c0_5, %c0_6] : memref<1x128xf32, #tpu.memory_space<vmem>>, vector<1x128xf32>
    %4 = arith.truncf %0 : vector<8x32xf32> to vector<8x32xbf16>
    %cst = arith.constant dense<0.000000e+00> : vector<8x128xf32>
    %5 = tpu.matmul %4, %1, %cst {dimension_numbers = #tpu.dot_dimension_numbers<[1], [0], [0], [1], [0, 0, 1, 1], [], []>} : vector<8x32xbf16>, vector<32x128xbf16>, vector<8x128xf32> -> vector<8x128xf32>
    %cst_7 = arith.constant dense<0.000000e+00> : vector<128xf32>
    %6 = vector.multi_reduction <add>, %5, %cst_7 [0] : vector<8x128xf32> to vector<128xf32>
    %7 = vector.shape_cast %6 : vector<128xf32> to vector<1x128xf32>
    %cst_8 = arith.constant 1.250000e-01 : f32
    %8 = vector.broadcast %cst_8 : f32 to vector<1x128xf32>
    %9 = arith.mulf %7, %8 : vector<1x128xf32>
    %10 = arith.mulf %5, %5 : vector<8x128xf32>
    %cst_9 = arith.constant dense<0.000000e+00> : vector<128xf32>
    %11 = vector.multi_reduction <add>, %10, %cst_9 [0] : vector<8x128xf32> to vector<128xf32>
    %12 = vector.shape_cast %11 : vector<128xf32> to vector<1x128xf32>
    %cst_10 = arith.constant 1.250000e-01 : f32
    %13 = vector.broadcast %cst_10 : f32 to vector<1x128xf32>
    %14 = arith.mulf %12, %13 : vector<1x128xf32>
    %15 = arith.mulf %9, %9 : vector<1x128xf32>
    %16 = arith.subf %14, %15 : vector<1x128xf32>
    %cst_11 = arith.constant 9.99999974E-6 : f32
    %17 = vector.broadcast %cst_11 : f32 to vector<1x128xf32>
    %18 = arith.addf %16, %17 : vector<1x128xf32>
    %19 = math.rsqrt %18 : vector<1x128xf32>
    %20 = arith.mulf %2, %19 : vector<1x128xf32>
    %21 = arith.mulf %9, %20 : vector<1x128xf32>
    %22 = arith.subf %3, %21 : vector<1x128xf32>
    %23 = vector.broadcast %20 : vector<1x128xf32> to vector<8x128xf32>
    %24 = arith.mulf %5, %23 : vector<8x128xf32>
    %25 = vector.broadcast %22 : vector<1x128xf32> to vector<8x128xf32>
    %26 = arith.addf %24, %25 : vector<8x128xf32>
    %cst_12 = arith.constant 0.000000e+00 : f32
    %27 = vector.broadcast %cst_12 : f32 to vector<8x128xf32>
    %28 = arith.maximumf %26, %27 : vector<8x128xf32>
    %c0_13 = arith.constant 0 : index
    %c0_14 = arith.constant 0 : index
    %29 = vector.load %arg4[%c0_13, %c0_14] : memref<128x256xbf16, #tpu.memory_space<vmem>>, vector<128x256xbf16>
    %c0_15 = arith.constant 0 : index
    %c0_16 = arith.constant 0 : index
    %30 = vector.load %arg5[%c0_15, %c0_16] : memref<1x256xf32, #tpu.memory_space<vmem>>, vector<1x256xf32>
    %c0_17 = arith.constant 0 : index
    %c0_18 = arith.constant 0 : index
    %31 = vector.load %arg6[%c0_17, %c0_18] : memref<1x256xf32, #tpu.memory_space<vmem>>, vector<1x256xf32>
    %32 = arith.truncf %28 : vector<8x128xf32> to vector<8x128xbf16>
    %cst_19 = arith.constant dense<0.000000e+00> : vector<8x256xf32>
    %33 = tpu.matmul %32, %29, %cst_19 {dimension_numbers = #tpu.dot_dimension_numbers<[1], [0], [0], [1], [0, 0, 1, 1], [], []>} : vector<8x128xbf16>, vector<128x256xbf16>, vector<8x256xf32> -> vector<8x256xf32>
    %cst_20 = arith.constant dense<0.000000e+00> : vector<256xf32>
    %34 = vector.multi_reduction <add>, %33, %cst_20 [0] : vector<8x256xf32> to vector<256xf32>
    %35 = vector.shape_cast %34 : vector<256xf32> to vector<1x256xf32>
    %cst_21 = arith.constant 1.250000e-01 : f32
    %36 = vector.broadcast %cst_21 : f32 to vector<1x256xf32>
    %37 = arith.mulf %35, %36 : vector<1x256xf32>
    %38 = arith.mulf %33, %33 : vector<8x256xf32>
    %cst_22 = arith.constant dense<0.000000e+00> : vector<256xf32>
    %39 = vector.multi_reduction <add>, %38, %cst_22 [0] : vector<8x256xf32> to vector<256xf32>
    %40 = vector.shape_cast %39 : vector<256xf32> to vector<1x256xf32>
    %cst_23 = arith.constant 1.250000e-01 : f32
    %41 = vector.broadcast %cst_23 : f32 to vector<1x256xf32>
    %42 = arith.mulf %40, %41 : vector<1x256xf32>
    %43 = arith.mulf %37, %37 : vector<1x256xf32>
    %44 = arith.subf %42, %43 : vector<1x256xf32>
    %cst_24 = arith.constant 9.99999974E-6 : f32
    %45 = vector.broadcast %cst_24 : f32 to vector<1x256xf32>
    %46 = arith.addf %44, %45 : vector<1x256xf32>
    %47 = math.rsqrt %46 : vector<1x256xf32>
    %48 = arith.mulf %30, %47 : vector<1x256xf32>
    %49 = arith.mulf %37, %48 : vector<1x256xf32>
    %50 = arith.subf %31, %49 : vector<1x256xf32>
    %51 = vector.broadcast %48 : vector<1x256xf32> to vector<8x256xf32>
    %52 = arith.mulf %33, %51 : vector<8x256xf32>
    %53 = vector.broadcast %50 : vector<1x256xf32> to vector<8x256xf32>
    %54 = arith.addf %52, %53 : vector<8x256xf32>
    %cst_25 = arith.constant 0.000000e+00 : f32
    %55 = vector.broadcast %cst_25 : f32 to vector<8x256xf32>
    %56 = arith.maximumf %54, %55 : vector<8x256xf32>
    %c0_26 = arith.constant 0 : index
    %c0_27 = arith.constant 0 : index
    %57 = vector.load %arg7[%c0_26, %c0_27] : memref<256x256xbf16, #tpu.memory_space<vmem>>, vector<256x256xbf16>
    %c0_28 = arith.constant 0 : index
    %c0_29 = arith.constant 0 : index
    %58 = vector.load %arg8[%c0_28, %c0_29] : memref<1x256xf32, #tpu.memory_space<vmem>>, vector<1x256xf32>
    %c0_30 = arith.constant 0 : index
    %c0_31 = arith.constant 0 : index
    %59 = vector.load %arg9[%c0_30, %c0_31] : memref<1x256xf32, #tpu.memory_space<vmem>>, vector<1x256xf32>
    %60 = arith.truncf %56 : vector<8x256xf32> to vector<8x256xbf16>
    %cst_32 = arith.constant dense<0.000000e+00> : vector<8x256xf32>
    %61 = tpu.matmul %60, %57, %cst_32 {dimension_numbers = #tpu.dot_dimension_numbers<[1], [0], [0], [1], [0, 0, 1, 1], [], []>} : vector<8x256xbf16>, vector<256x256xbf16>, vector<8x256xf32> -> vector<8x256xf32>
    %cst_33 = arith.constant dense<0.000000e+00> : vector<256xf32>
    %62 = vector.multi_reduction <add>, %61, %cst_33 [0] : vector<8x256xf32> to vector<256xf32>
    %63 = vector.shape_cast %62 : vector<256xf32> to vector<1x256xf32>
    %cst_34 = arith.constant 1.250000e-01 : f32
    %64 = vector.broadcast %cst_34 : f32 to vector<1x256xf32>
    %65 = arith.mulf %63, %64 : vector<1x256xf32>
    %66 = arith.mulf %61, %61 : vector<8x256xf32>
    %cst_35 = arith.constant dense<0.000000e+00> : vector<256xf32>
    %67 = vector.multi_reduction <add>, %66, %cst_35 [0] : vector<8x256xf32> to vector<256xf32>
    %68 = vector.shape_cast %67 : vector<256xf32> to vector<1x256xf32>
    %cst_36 = arith.constant 1.250000e-01 : f32
    %69 = vector.broadcast %cst_36 : f32 to vector<1x256xf32>
    %70 = arith.mulf %68, %69 : vector<1x256xf32>
    %71 = arith.mulf %65, %65 : vector<1x256xf32>
    %72 = arith.subf %70, %71 : vector<1x256xf32>
    %cst_37 = arith.constant 9.99999974E-6 : f32
    %73 = vector.broadcast %cst_37 : f32 to vector<1x256xf32>
    %74 = arith.addf %72, %73 : vector<1x256xf32>
    %75 = math.rsqrt %74 : vector<1x256xf32>
    %76 = arith.mulf %58, %75 : vector<1x256xf32>
    %77 = arith.mulf %65, %76 : vector<1x256xf32>
    %78 = arith.subf %59, %77 : vector<1x256xf32>
    %79 = vector.broadcast %76 : vector<1x256xf32> to vector<8x256xf32>
    %80 = arith.mulf %61, %79 : vector<8x256xf32>
    %81 = vector.broadcast %78 : vector<1x256xf32> to vector<8x256xf32>
    %82 = arith.addf %80, %81 : vector<8x256xf32>
    %cst_38 = arith.constant 0.000000e+00 : f32
    %83 = vector.broadcast %cst_38 : f32 to vector<8x256xf32>
    %84 = arith.maximumf %82, %83 : vector<8x256xf32>
    %c0_39 = arith.constant 0 : index
    %c0_40 = arith.constant 0 : index
    %85 = vector.load %arg10[%c0_39, %c0_40] : memref<256x512xbf16, #tpu.memory_space<vmem>>, vector<256x512xbf16>
    %c0_41 = arith.constant 0 : index
    %c0_42 = arith.constant 0 : index
    %86 = vector.load %arg11[%c0_41, %c0_42] : memref<1x512xf32, #tpu.memory_space<vmem>>, vector<1x512xf32>
    %c0_43 = arith.constant 0 : index
    %c0_44 = arith.constant 0 : index
    %87 = vector.load %arg12[%c0_43, %c0_44] : memref<1x512xf32, #tpu.memory_space<vmem>>, vector<1x512xf32>
    %88 = arith.truncf %84 : vector<8x256xf32> to vector<8x256xbf16>
    %cst_45 = arith.constant dense<0.000000e+00> : vector<8x512xf32>
    %89 = tpu.matmul %88, %85, %cst_45 {dimension_numbers = #tpu.dot_dimension_numbers<[1], [0], [0], [1], [0, 0, 1, 1], [], []>} : vector<8x256xbf16>, vector<256x512xbf16>, vector<8x512xf32> -> vector<8x512xf32>
    %cst_46 = arith.constant dense<0.000000e+00> : vector<512xf32>
    %90 = vector.multi_reduction <add>, %89, %cst_46 [0] : vector<8x512xf32> to vector<512xf32>
    %91 = vector.shape_cast %90 : vector<512xf32> to vector<1x512xf32>
    %cst_47 = arith.constant 1.250000e-01 : f32
    %92 = vector.broadcast %cst_47 : f32 to vector<1x512xf32>
    %93 = arith.mulf %91, %92 : vector<1x512xf32>
    %94 = arith.mulf %89, %89 : vector<8x512xf32>
    %cst_48 = arith.constant dense<0.000000e+00> : vector<512xf32>
    %95 = vector.multi_reduction <add>, %94, %cst_48 [0] : vector<8x512xf32> to vector<512xf32>
    %96 = vector.shape_cast %95 : vector<512xf32> to vector<1x512xf32>
    %cst_49 = arith.constant 1.250000e-01 : f32
    %97 = vector.broadcast %cst_49 : f32 to vector<1x512xf32>
    %98 = arith.mulf %96, %97 : vector<1x512xf32>
    %99 = arith.mulf %93, %93 : vector<1x512xf32>
    %100 = arith.subf %98, %99 : vector<1x512xf32>
    %cst_50 = arith.constant 9.99999974E-6 : f32
    %101 = vector.broadcast %cst_50 : f32 to vector<1x512xf32>
    %102 = arith.addf %100, %101 : vector<1x512xf32>
    %103 = math.rsqrt %102 : vector<1x512xf32>
    %104 = arith.mulf %86, %103 : vector<1x512xf32>
    %105 = arith.mulf %93, %104 : vector<1x512xf32>
    %106 = arith.subf %87, %105 : vector<1x512xf32>
    %107 = vector.broadcast %104 : vector<1x512xf32> to vector<8x512xf32>
    %108 = arith.mulf %89, %107 : vector<8x512xf32>
    %109 = vector.broadcast %106 : vector<1x512xf32> to vector<8x512xf32>
    %110 = arith.addf %108, %109 : vector<8x512xf32>
    %cst_51 = arith.constant 0.000000e+00 : f32
    %111 = vector.broadcast %cst_51 : f32 to vector<8x512xf32>
    %112 = arith.maximumf %110, %111 : vector<8x512xf32>
    %c0_52 = arith.constant 0 : index
    %c0_53 = arith.constant 0 : index
    %113 = vector.load %arg13[%c0_52, %c0_53] : memref<8x512xf32, #tpu.memory_space<vmem>>, vector<8x512xf32>
    tpu.vector_store %arg13[%c0_52, %c0_53], %112 {strides = array<i32>} : memref<8x512xf32, #tpu.memory_space<vmem>>, vector<8x512xf32>,
    return
  }
}

</mosaic_0001>

<bundles_post_ra>
// kernel: fc_encoder_forward.1
= control target key start
LH: loop header
LB: loop body
LE: loop exit
PB: predicated region body
PF: predicated region fallthrough
CT: control target
= control target key end

     0   :  { %18 = vsyncpa [#allocation3], 0  ;;  %s2269_s0 = inlined_call_operand.hbm [shape: f32[8,32], index: 0, kind: input, shape index: {}]   ;;  %s2270_s1 = inlined_call_operand.hbm [shape: bf16[32,128], index: 1, kind: input, shape index: {}]   ;;  %s2271_s2 = inlined_call_operand.vmem [shape: f32[1,128], index: 2, kind: input, shape index: {}]   ;;  %s2272_s3 = inlined_call_operand.hbm [shape: f32[1,128], index: 3, kind: input, shape index: {}]   ;;  %s2273_s4 = inlined_call_operand.hbm [shape: bf16[128,256], index: 4, kind: input, shape index: {}]   ;;  %s2274_s5 = inlined_call_operand.vmem [shape: f32[1,256], index: 5, kind: input, shape index: {}]   ;;  %s2275_s6 = inlined_call_operand.vmem [shape: f32[1,256], index: 6, kind: input, shape index: {}]   ;;  %s2276_s7 = inlined_call_operand.hbm [shape: bf16[256,256], index: 7, kind: input, shape index: {}]   ;;  %s2277_s8 = inlined_call_operand.vmem [shape: f32[1,256], index: 8, kind: input, shape index: {}]   ;;  %s2278_s9 = inlined_call_operand.vmem [shape: f32[1,256], index: 9, kind: input, shape index: {}]   ;;  %s2279_s10 = inlined_call_operand.hbm [shape: bf16[256,512], index: 10, kind: input, shape index: {}]   ;;  %s2280_s11 = inlined_call_operand.vmem [shape: f32[1,512], index: 11, kind: input, shape index: {}]   ;;  %s2281_s12 = inlined_call_operand.vmem [shape: f32[1,512], index: 12, kind: input, shape index: {}]   ;;  %s2282_s13 = inlined_call_operand.hbm [shape: f32[8,512], index: 13, kind: output, shape index: {}]  }
   0x1   :  { %19 = vsyncpa [#allocation6], 0 }
   0x2   :  { %20 = vsyncpa [#allocation9], 0 }
   0x3   :  { %21 = vsyncpa [#allocation12], 0 }
   0x4   :  { %22 = vsyncpa [#allocation4], 0  ;;  %s1995_s25 = smov [#allocation5]   ;;  %s1831_s29 = scalar_lea.hbm %s2270_s1, 256 }
   0x5   :  { %s38_s26 = sshll.u32 %s1995_s25, 4  ;;  %p1832_p0 = scmp.ne.s32.totalorder %s2270_s1, %s1831_s29  ;;  %s39_s26 = int_to_ptr.vmem [resolvable:$true] %s38_s26 }
   0x6   :  { %p1835_p1 = scmp.lt.u32.totalorder %s1831_s29, %s2270_s1 }
   0x8   :  { %p1837_p2 = pnand %p1835_p1, %p1832_p0 }
   0xa   :  { %1840 = shalt.err (!%p1837_p2)
}
   0xb   :  { %s1841_s17 = scalar_lea.vmem %s39_s26, 256  ;;  %p1846_p4 = scmp.lt.s32.totalorder %s39_s26, %s39_s26 }
   0xc   :  { %p1842_p3 = scmp.ne.s32.totalorder %s39_s26, %s1841_s17  ;;  %p1847_p5 = scmp.lt.s32.totalorder %s1841_s17, %s1841_s17 }
   0xe   :  { %p1848_p6 = por %p1847_p5, %p1846_p4 }
  0x10   :  { %p1849_p7 = pnand %p1848_p6, %p1842_p3 }
  0x12   :  { %1852 = shalt.err (!%p1849_p7)
}
  0x13   :  { %s1996_s18 = smov 64   ;;  %s1997_s19 = smov 4  }
  0x14   :  { %44 = dma.hbm_to_vmem [thread:$0]  %s2270_s1, 256, %s39_s26, [#allocation6], %s1996_s18, %s1996_s18, %s1997_s19  }
  0x15   :  { %s1998_s22 = smov [#allocation8]   ;;  %s1853_s27 = scalar_lea.hbm %s2273_s4, 2048 }
  0x16   :  { %s62_s23 = sshll.u32 %s1998_s22, 4  ;;  %p1854_p8 = scmp.ne.s32.totalorder %s2273_s4, %s1853_s27  ;;  %s63_s23 = int_to_ptr.vmem [resolvable:$true] %s62_s23 }
  0x17   :  { %p1857_p9 = scmp.lt.u32.totalorder %s1853_s27, %s2273_s4 }
  0x19   :  { %p1859_p10 = pnand %p1857_p9, %p1854_p8 }
  0x1b   :  { %1862 = shalt.err (!%p1859_p10)
}
  0x1c   :  { %s1863_s15 = scalar_lea.vmem %s63_s23, 2048  ;;  %p1868_p12 = scmp.lt.s32.totalorder %s63_s23, %s63_s23 }
  0x1d   :  { %p1864_p11 = scmp.ne.s32.totalorder %s63_s23, %s1863_s15  ;;  %p1869_p13 = scmp.lt.s32.totalorder %s1863_s15, %s1863_s15 }
  0x1f   :  { %p1870_p0 = por %p1869_p13, %p1868_p12 }
  0x21   :  { %p1871_p1 = pnand %p1870_p0, %p1864_p11 }
  0x23   :  { %1874 = shalt.err (!%p1871_p1)
}
  0x24   :  { %s1999_s1 = smov 128   ;;  %s2000_s26 = smov 8  }
  0x25   :  { %68 = dma.hbm_to_vmem [thread:$0]  %s2273_s4, 2048, %s63_s23, [#allocation9], %s1999_s1, %s1999_s1, %s2000_s26  }
  0x26   :  { %s2001_s18 = smov [#allocation2]   ;;  %s2002_s20 = smov [#allocation7]  }
  0x27   :  { %s29_s19 = sshll.u32 %s2001_s18, 4  ;;  %s53_s21 = sshll.u32 %s2002_s20, 4  ;;  %s30_s19 = int_to_ptr.vmem [resolvable:$true] %s29_s19  ;;  %s54_s21 = int_to_ptr.vmem [resolvable:$true] %s53_s21 }
  0x28   :  { %s1875_s25 = scalar_lea.hbm %s2269_s0, 128 }
  0x29   :  { %p1876_p2 = scmp.ne.s32.totalorder %s2269_s0, %s1875_s25  ;;  %p1879_p3 = scmp.lt.u32.totalorder %s1875_s25, %s2269_s0 }
  0x2b   :  { %p1881_p4 = pnand %p1879_p3, %p1876_p2 }
  0x2d   :  { %1884 = shalt.err (!%p1881_p4)
}
  0x2e   :  { %s1885_s4 = scalar_lea.vmem %s30_s19, 128  ;;  %p1890_p6 = scmp.lt.s32.totalorder %s30_s19, %s30_s19 }
  0x2f   :  { %p1886_p5 = scmp.ne.s32.totalorder %s30_s19, %s1885_s4  ;;  %p1891_p7 = scmp.lt.s32.totalorder %s1885_s4, %s1885_s4 }
  0x31   :  { %p1892_p8 = por %p1891_p7, %p1890_p6 }
  0x33   :  { %p1893_p9 = pnand %p1892_p8, %p1886_p5 }
  0x35   :  { %1896 = shalt.err (!%p1893_p9)
}
  0x36   :  { %32 = dma.hbm_to_vmem [thread:$0]  %s2269_s0, 128, %s30_s19, [#allocation3]  }
  0x37   :  { %s1897_s17 = scalar_lea.hbm %s2272_s3, 16 }
  0x38   :  { %p1898_p10 = scmp.ne.s32.totalorder %s2272_s3, %s1897_s17  ;;  %p1901_p11 = scmp.lt.u32.totalorder %s1897_s17, %s2272_s3 }
  0x3a   :  { %p1903_p12 = pnand %p1901_p11, %p1898_p10 }
  0x3c   :  { %1906 = shalt.err (!%p1903_p12)
}
  0x3d   :  { %s1907_s25 = scalar_lea.vmem %s54_s21, 16  ;;  %s1911_s27 = scalar_lea.vmem %s54_s21, 32 }
  0x3e   :  { %p1908_p13 = scmp.ne.s32.totalorder %s54_s21, %s1907_s25  ;;  %p1912_p0 = scmp.lt.s32.totalorder %s54_s21, %s54_s21 }
  0x3f   :  { %p1913_p1 = scmp.lt.s32.totalorder %s1911_s27, %s1907_s25 }
  0x41   :  { %p1914_p2 = por %p1913_p1, %p1912_p0 }
  0x43   :  { %p1915_p3 = pnand %p1914_p2, %p1908_p13 }
  0x45   :  { %1918 = shalt.err (!%p1915_p3)
}
  0x46   :  { %56 = dma.hbm_to_vmem [thread:$0]  %s2272_s3, 16, %s54_s21, [#allocation6]  }
  0x47   :  { %s2003_s28 = smov [#allocation10]   ;;  %s2004_s30 = smov [#allocation11]  }
  0x48   :  { %s78_s29 = sshll.u32 %s2003_s28, 4  ;;  %s94_s4 = sshll.u32 %s2004_s30, 4  ;;  %s79_s29 = int_to_ptr.vmem [resolvable:$true] %s78_s29  ;;  %s2133_s4 = int_to_ptr.vmem [resolvable:$true] %s94_s4 }
  0x49   :  { %s1919_s15 = scalar_lea.hbm %s2276_s7, 4096 }
  0x4a   :  { %p1920_p4 = scmp.ne.s32.totalorder %s2276_s7, %s1919_s15  ;;  %p1923_p5 = scmp.lt.u32.totalorder %s1919_s15, %s2276_s7 }
  0x4c   :  { %p1925_p6 = pnand %p1923_p5, %p1920_p4 }
  0x4e   :  { %1928 = shalt.err (!%p1925_p6)
}
  0x4f   :  { %s1929_s3 = scalar_lea.vmem %s79_s29, 4096  ;;  %p1934_p8 = scmp.lt.s32.totalorder %s79_s29, %s79_s29 }
  0x50   :  { %p1930_p7 = scmp.ne.s32.totalorder %s79_s29, %s1929_s3  ;;  %p1935_p9 = scmp.lt.s32.totalorder %s1929_s3, %s1929_s3 }
  0x52   :  { %p1936_p10 = por %p1935_p9, %p1934_p8 }
  0x54   :  { %p1937_p11 = pnand %p1936_p10, %p1930_p7 }
  0x56   :  { %1940 = shalt.err (!%p1937_p11)
}
  0x57   :  { %84 = dma.hbm_to_vmem [thread:$0]  %s2276_s7, 4096, %s79_s29, [#allocation9], %s1999_s1, %s1999_s1, %s2000_s26  }
  0x58   :  { %s1941_s27 = scalar_lea.hbm %s2279_s10, 8192 }
  0x59   :  { %p1942_p12 = scmp.ne.s32.totalorder %s2279_s10, %s1941_s27  ;;  %p1945_p13 = scmp.lt.u32.totalorder %s1941_s27, %s2279_s10 }
  0x5b   :  { %p1947_p0 = pnand %p1945_p13, %p1942_p12 }
  0x5d   :  { %1950 = shalt.err (!%p1947_p0)
}
  0x5e   :  { %s1951_s23 = scalar_lea.vmem %s2133_s4, 8192  ;;  %p1956_p2 = scmp.lt.s32.totalorder %s2133_s4, %s2133_s4 }
  0x5f   :  { %p1952_p1 = scmp.ne.s32.totalorder %s2133_s4, %s1951_s23  ;;  %p1957_p3 = scmp.lt.s32.totalorder %s1951_s23, %s1951_s23 }
  0x61   :  { %p1958_p4 = por %p1957_p3, %p1956_p2 }
  0x63   :  { %p1959_p5 = pnand %p1958_p4, %p1952_p1 }
  0x65   :  { %1962 = shalt.err (!%p1959_p5)
}
  0x66   :  { %s2005_s7 = smov 256   ;;  %s2006_s1 = smov 16  }
  0x67   :  { %100 = dma.hbm_to_vmem [thread:$0]  %s2279_s10, 8192, %s2133_s4, [#allocation12], %s2005_s7, %s2005_s7, %s2006_s1  }
  0x68   :  { %1985 = dma.done.wait [#allocation3], 128  }
  0x69   :  { %1986 = vsyncadd [#allocation3], 4294967168 }
  0x6a   :  { %1987 = dma.done.wait [#allocation6], 272  }
  0x6b   :  { %1988 = vsyncadd [#allocation6], 4294967024 }
  0x6c   :  { %1989 = dma.done.wait [#allocation9], 6144  }
  0x6d   :  { %1990 = vsyncadd [#allocation9], 4294961152 }
  0x6e   :  { %1991 = dma.done.wait [#allocation12], 8192  }
  0x6f   :  { %1992 = vsyncadd [#allocation12], 4294959104  ;;  %v2007_v0 = vmov 0.0   ;;  %vm2008_vm0 = vmmov 0   ;;  %v1643_v1 = vld [vmem:[#allocation5] sm:$0xff]   ;;  %v1644_v2 = vld [vmem:[#allocation5 + $0x8] sm:$0xff]   ;;  %v211_v46 = vlaneseq }
  0x70   :  { %1618 = vmatprep.subr.bf16.mxu1 %v2007_v0  ;;  %1622 = vmatprep.mubr.msk.bf16.mxu1 %vm2008_vm0, %v2007_v0  ;;  %v124_v3 = vld [vmem:[#allocation2] sm:$0xff]  ;;  %vm144_vm1 = vcmask 261120   ;;  %v1650_v7 = vld [vmem:[#allocation8 + $0x14] ss:$8 sps:$4 sm:$0xff]   ;;  %v1648_v8 = vld [vmem:[#allocation8 + $0x10] ss:$8 sps:$4 sm:$0xff]  }
  0x71   :  { %1619 = vmatpush3.bf16.msra.mxu1 %v1643_v1  ;;  %v131_v4 = vpack.c.bf16 %v124_v3, %v124_v3  ;;  %v1647_v5 = vld [vmem:[#allocation8 + $0x4] ss:$8 sps:$4 sm:$0xff]   ;;  %v1645_v6 = vld [vmem:[#allocation8] ss:$8 sps:$4 sm:$0xff]   ;;  %v1656_v11 = vld [vmem:[#allocation8 + $0x34] ss:$8 sps:$4 sm:$0xff]  }
  0x72   :  { %1620 = vmatprep.subr.bf16.mxu1 %v2007_v0  ;;  %v1653_v9 = vld [vmem:[#allocation8 + $0x24] ss:$8 sps:$4 sm:$0xff]   ;;  %v1651_v10 = vld [vmem:[#allocation8 + $0x20] ss:$8 sps:$4 sm:$0xff]   ;;  %v1654_v12 = vld [vmem:[#allocation8 + $0x30] ss:$8 sps:$4 sm:$0xff]  }
  0x73   :  { %v1659_v13 = vld [vmem:[#allocation8 + $0x44] ss:$8 sps:$4 sm:$0xff]   ;;  %v1657_v14 = vld [vmem:[#allocation8 + $0x40] ss:$8 sps:$4 sm:$0xff]   ;;  %v1662_v15 = vld [vmem:[#allocation8 + $0x54] ss:$8 sps:$4 sm:$0xff]  }
  0x74   :  { %v1660_v16 = vld [vmem:[#allocation8 + $0x50] ss:$8 sps:$4 sm:$0xff]   ;;  %v1665_v17 = vld [vmem:[#allocation8 + $0x64] ss:$8 sps:$4 sm:$0xff]   ;;  %v1663_v18 = vld [vmem:[#allocation8 + $0x60] ss:$8 sps:$4 sm:$0xff]  }
  0x75   :  { %1621 = vmatpush3.bf16.msra.mxu1 %v1644_v2  ;;  %v1666_v19 = vld [vmem:[#allocation8 + $0x70] ss:$8 sps:$4 sm:$0xff]   ;;  %v1668_v20 = vld [vmem:[#allocation8 + $0x74] ss:$8 sps:$4 sm:$0xff]   ;;  %v2009_v21 = vmov 0   ;;  %v2167_v47 = vshrl.u32 %v211_v46, 7 }
  0x76   :  { %324 = vmatprep.subr.bf16.mxu1 %v1647_v5  ;;  %v1669_v22 = vld [vmem:[#allocation10 + $0x4] ss:$8 sps:$4 sm:$0xff]   ;;  %v1671_v23 = vld [vmem:[#allocation10] ss:$8 sps:$4 sm:$0xff]   ;;  %v130_v52 = vld [vmem:[#allocation7] sm:$0x1] }
  0x77   :  { %667 = vmatprep.subr.bf16.mxu0 %v1669_v22  ;;  %v129_v48 = vld [vmem:[%s2271_s2] sm:$0x1]  ;;  %v2173_v49 = vsub.s32 0, %v2167_v47  ;;  %v1672_v61 = vld [vmem:[#allocation10 + $0x14] ss:$8 sps:$4 sm:$0xff]   ;;  %s2011_s3 = smov [#allocation13]  }
  0x78   :  { %1623 = vmatmul.mubr.msk.bf16.vlgmr.msra.gmra.mrb[0].mxu1 %vm144_vm1, %v131_v4  ;;  %668 = vmatpush1.bf16.msra.mxu0 %v1671_v23  ;;  %v1674_v62 = vld [vmem:[#allocation10 + $0x10] ss:$8 sps:$4 sm:$0xff]   ;;  %v1675_v63 = vld [vmem:[#allocation10 + $0x24] ss:$8 sps:$4 sm:$0xff]   ;;  %v1677_v0 = vld [vmem:[#allocation10 + $0x20] ss:$8 sps:$4 sm:$0xff]  }
  0x79   :  { %325 = vmatpush1.bf16.msra.mxu1 %v1645_v6  ;;  %356 = vmatprep.mubr.bf16.mxu1 %v2009_v21  ;;  %v1678_v1 = vld [vmem:[#allocation10 + $0x34] ss:$8 sps:$4 sm:$0xff]   ;;  %v1680_v2 = vld [vmem:[#allocation10 + $0x30] ss:$8 sps:$4 sm:$0xff]   ;;  %v1681_v3 = vld [vmem:[#allocation10 + $0x44] ss:$8 sps:$4 sm:$0xff]  }
  0x7a   :  { %326 = vmatprep.subr.bf16.mxu1 %v1650_v7  ;;  %669 = vmatprep.subr.bf16.mxu0 %v1672_v61  ;;  %v1683_v4 = vld [vmem:[#allocation10 + $0x40] ss:$8 sps:$4 sm:$0xff]   ;;  %v1684_v5 = vld [vmem:[#allocation10 + $0x54] ss:$8 sps:$4 sm:$0xff]   ;;  %v1686_v6 = vld [vmem:[#allocation10 + $0x50] ss:$8 sps:$4 sm:$0xff]  }
  0x7b   :  { %v1687_v7 = vld [vmem:[#allocation10 + $0x64] ss:$8 sps:$4 sm:$0xff]   ;;  %v1708_v21 = vld [vmem:[#allocation10 + $0xd4] ss:$8 sps:$4 sm:$0xff]   ;;  %v1710_v22 = vld [vmem:[#allocation10 + $0xd0] ss:$8 sps:$4 sm:$0xff]  }
  0x7c   :  { %670 = vmatpush1.bf16.msra.mxu0 %v1674_v62  ;;  %v1711_v23 = vld [vmem:[#allocation10 + $0xe4] ss:$8 sps:$4 sm:$0xff]   ;;  %s1488_s21 = sshll.u32 %s2011_s3, 4  ;;  %s1489_s21 = int_to_ptr.vmem [resolvable:$true] %s1488_s21 }
  0x7d   :  { %327 = vmatpush1.bf16.msra.mxu1 %v1648_v8  ;;  %671 = vmatprep.subr.bf16.mxu0 %v1675_v63  ;;  %v1689_v8 = vld [vmem:[#allocation10 + $0x60] ss:$8 sps:$4 sm:$0xff]   ;;  %p1968_p7 = scmp.lt.s32.totalorder %s1489_s21, %s1489_s21 }
  0x7e   :  { %328 = vmatprep.subr.bf16.mxu1 %v1653_v9  ;;  %v1690_v9 = vld [vmem:[#allocation10 + $0x74] ss:$8 sps:$4 sm:$0xff]  }
  0x80   :  { %672 = vmatpush1.bf16.msra.mxu0 %v1677_v0 }
  0x81   :  { %329 = vmatpush1.bf16.msra.mxu1 %v1651_v10  ;;  %673 = vmatprep.subr.bf16.mxu0 %v1678_v1  ;;  %v1692_v10 = vld [vmem:[#allocation10 + $0x70] ss:$8 sps:$4 sm:$0xff]  }
  0x82   :  { %330 = vmatprep.subr.bf16.mxu1 %v1656_v11  ;;  %v1693_v11 = vld [vmem:[#allocation10 + $0x84] ss:$8 sps:$4 sm:$0xff]  }
  0x84   :  { %674 = vmatpush1.bf16.msra.mxu0 %v1680_v2 }
  0x85   :  { %331 = vmatpush1.bf16.msra.mxu1 %v1654_v12  ;;  %675 = vmatprep.subr.bf16.mxu0 %v1681_v3  ;;  %v1695_v12 = vld [vmem:[#allocation10 + $0x80] ss:$8 sps:$4 sm:$0xff]  }
  0x86   :  { %332 = vmatprep.subr.bf16.mxu1 %v1659_v13  ;;  %v1696_v13 = vld [vmem:[#allocation10 + $0x94] ss:$8 sps:$4 sm:$0xff]  }
  0x88   :  { %676 = vmatpush1.bf16.msra.mxu0 %v1683_v4 }
  0x89   :  { %333 = vmatpush1.bf16.msra.mxu1 %v1657_v14  ;;  %677 = vmatprep.subr.bf16.mxu0 %v1684_v5  ;;  %v1698_v14 = vld [vmem:[#allocation10 + $0x90] ss:$8 sps:$4 sm:$0xff]  }
  0x8a   :  { %334 = vmatprep.subr.bf16.mxu1 %v1662_v15  ;;  %v1699_v15 = vld [vmem:[#allocation10 + $0xa4] ss:$8 sps:$4 sm:$0xff]  }
  0x8c   :  { %678 = vmatpush1.bf16.msra.mxu0 %v1686_v6 }
  0x8d   :  { %335 = vmatpush1.bf16.msra.mxu1 %v1660_v16  ;;  %679 = vmatprep.subr.bf16.mxu0 %v1687_v7  ;;  %v1701_v16 = vld [vmem:[#allocation10 + $0xa0] ss:$8 sps:$4 sm:$0xff]  }
  0x8e   :  { %336 = vmatprep.subr.bf16.mxu1 %v1665_v17  ;;  %v1702_v17 = vld [vmem:[#allocation10 + $0xb4] ss:$8 sps:$4 sm:$0xff]  }
  0x90   :  { %680 = vmatpush1.bf16.msra.mxu0 %v1689_v8  ;;  %v2010_v8 = vmov 1966171168  }
  0x91   :  { %337 = vmatpush1.bf16.msra.mxu1 %v1663_v18  ;;  %681 = vmatprep.subr.bf16.mxu0 %v1690_v9  ;;  %v1704_v18 = vld [vmem:[#allocation10 + $0xb0] ss:$8 sps:$4 sm:$0xff]   ;;  %v407_v9 = vunpack.c.l.s4 %v2010_v8 }
  0x92   :  { %338 = vmatprep.subr.bf16.mxu1 %v1668_v20  ;;  %v1707_v20 = vld [vmem:[#allocation10 + $0xc0] ss:$8 sps:$4 sm:$0xff]  }
  0x93   :  { %v1765_v8 = vld [vmem:[#allocation11 + $0x100] ss:$16 sps:$4 sm:$0xff]  }
  0x94   :  { %682 = vmatpush1.bf16.msra.mxu0 %v1692_v10  ;;  %v408_v10 = vunpack.c.0.s8 %v407_v9  ;;  %v1768_v9 = vld [vmem:[#allocation11 + $0x108] ss:$16 sps:$4 sm:$0xff]  }
  0x95   :  { %339 = vmatpush1.bf16.msra.mxu1 %v1666_v19  ;;  %683 = vmatprep.subr.bf16.mxu0 %v1693_v11  ;;  %v1705_v19 = vld [vmem:[#allocation10 + $0xc4] ss:$8 sps:$4 sm:$0xff]  }
  0x98   :  { %684 = vmatpush1.bf16.msra.mxu0 %v1695_v12  ;;  %v2178_v12 = vsub.s32 %v408_v10, %v2167_v47  ;;  %v1773_v10 = vld [vmem:[#allocation11 + $0x124] ss:$16 sps:$4 sm:$0xff]  }
  0x99   :  { %685 = vmatprep.subr.bf16.mxu0 %v1696_v13 }
  0x9c   :  { %686 = vmatpush1.bf16.msra.mxu0 %v1698_v14 }
  0x9d   :  { %687 = vmatprep.subr.bf16.mxu0 %v1699_v15 }
  0xa0   :  { %688 = vmatpush1.bf16.msra.mxu0 %v1701_v16  ;;  %v241_v16 = vld [vmem:[%s2274_s5] sm:$0x3] }
  0xa1   :  { %689 = vmatprep.subr.bf16.mxu0 %v1702_v17 }
  0xa4   :  { %690 = vmatpush1.bf16.msra.mxu0 %v1704_v18  ;;  %v2186_v18 = vsub.s32 1, %v2167_v47 }
  0xa5   :  { %691 = vmatprep.subr.bf16.mxu0 %v1705_v19 }
  0xa8   :  { %692 = vmatpush1.bf16.msra.mxu0 %v1707_v20 }
  0xa9   :  { %693 = vmatprep.subr.bf16.mxu0 %v1708_v21 }
  0xac   :  { %694 = vmatpush1.bf16.msra.mxu0 %v1710_v22 }
  0xad   :  { %695 = vmatprep.subr.bf16.mxu0 %v1711_v23 }
 0x14b   :  { %v182_v24 = vpop.f32.mrb[0].mxu1 }
 0x14c   :  { %v188_v25 = vrot.slane %v182_v24, 4  ;;  %v195_v26 = vmul.f32 %v182_v24, %v182_v24  ;;  %v1624_v27 = vpop.f32.mrb[1].mxu1 }
 0x14d   :  { %v185_v28 = vpop.f32.mrb[2].mxu1  ;;  %v1717_v27 = vld [vmem:[#allocation11] ss:$16 sps:$4 sm:$0xff]  }
 0x14e   :  { %v189_v29 = vadd.f32 %v188_v25, %v182_v24  ;;  %v196_v30 = vrot.slane %v195_v26, 4  ;;  %v1625_v31 = vpop.f32.mrb[3].mxu1  ;;  %v1714_v25 = vld [vmem:[#allocation10 + $0xf4] ss:$8 sps:$4 sm:$0xff]  }
 0x14f   :  { %v1719_v28 = vld [vmem:[#allocation11 + $0x4] ss:$16 sps:$4 sm:$0xff]  }
 0x150   :  { %v190_v32 = vrot.slane %v189_v29, 2  ;;  %v197_v33 = vadd.f32 %v196_v30, %v195_v26  ;;  %v1716_v26 = vld [vmem:[#allocation10 + $0xf0] ss:$8 sps:$4 sm:$0xff]   ;;  %1202 = vmatprep.subr.bf16.mxu1 %v1719_v28  ;;  %v242_v28 = vld [vmem:[%s2275_s6] sm:$0x3] }
 0x152   :  { %v191_v34 = vadd.f32 %v190_v32, %v189_v29  ;;  %v198_v35 = vrot.slane %v197_v33, 2  ;;  %v1722_v29 = vld [vmem:[#allocation11 + $0xc] ss:$16 sps:$4 sm:$0xff]  }
 0x154   :  { %v192_v36 = vrot.slane %v191_v34, 1  ;;  %v199_v37 = vadd.f32 %v198_v35, %v197_v33 }
 0x156   :  { %v193_v38 = vadd.f32 %v192_v36, %v191_v34  ;;  %v200_v39 = vrot.slane %v199_v37, 1 }
 0x158   :  { %v194_v40 = vmul.f32 0.125, %v193_v38  ;;  %v201_v41 = vadd.f32 %v200_v39, %v199_v37 }
 0x15a   :  { %v202_v42 = vmul.f32 0.125, %v201_v41  ;;  %v203_v43 = vmul.f32 %v194_v40, %v194_v40 }
 0x15c   :  { %v204_v44 = vsub.f32 %v202_v42, %v203_v43 }
 0x15e   :  { %v205_v45 = vadd.f32 1e-05, %v204_v44 }
 0x160   :  { %1813 = vrsqrt.f32 %v205_v45 }
 0x16a   :  { %v1814_v50 = vpop.eup %1813 }
 0x16b   :  { %v207_v51 = vmul.f32 %v1814_v50, %v129_v48 }
 0x16d   :  { %v208_v53 = vmul.f32 %v207_v51, %v194_v40  ;;  %v214_v54 = vrot.slane %v207_v51, %v2173_v49 }
 0x16f   :  { %v209_v55 = vsub.f32 %v130_v52, %v208_v53  ;;  %v216_v56 = vmul.f32 %v214_v54, %v182_v24  ;;  %v1713_v24 = vld [vmem:[#allocation10 + $0xe0] ss:$8 sps:$4 sm:$0xff]  }
 0x170   :  { %696 = vmatpush1.bf16.msra.mxu0 %v1713_v24 }
 0x171   :  { %v221_v57 = vrot.slane %v209_v55, %v2173_v49  ;;  %697 = vmatprep.subr.bf16.mxu0 %v1714_v25 }
 0x173   :  { %v223_v58 = vadd.f32 %v221_v57, %v216_v56 }
 0x174   :  { %698 = vmatpush1.bf16.msra.mxu0 %v1716_v26 }
 0x175   :  { %v224_v59 = vmax.f32 %v223_v58, 0.0  ;;  %1243 = vmatprep.subr.bf16.mxu0 %v1722_v29 }
 0x177   :  { %v243_v60 = vpack.c.bf16 %v224_v59, %v224_v59 }
 0x179   :  { %357 = vmatmul.mubr.bf16.vlgmr.msra.gmra.mrb[4].mxu1 %v243_v60 }
 0x17a   :  { %1203 = vmatpush1.bf16.msra.mxu1 %v1717_v27 }
 0x24c   :  { %v358_v30 = vpop.f32.mrb[4].mxu1 }
 0x24d   :  { %v365_v31 = vrot.slane %v358_v30, 4  ;;  %v379_v32 = vmul.f32 %v358_v30, %v358_v30  ;;  %v360_v33 = vpop.f32.mrb[5].mxu1 }
 0x24e   :  { %v371_v34 = vrot.slane %v360_v33, 4  ;;  %v380_v35 = vmul.f32 %v360_v33, %v360_v33  ;;  %v362_v36 = vpop.f32.mrb[6].mxu1 }
 0x24f   :  { %v366_v37 = vadd.f32 %v365_v31, %v358_v30  ;;  %v381_v38 = vrot.slane %v379_v32, 4  ;;  %v363_v39 = vpop.f32.mrb[7].mxu1 }
 0x250   :  { %v372_v40 = vadd.f32 %v371_v34, %v360_v33  ;;  %v387_v41 = vrot.slane %v380_v35, 4  ;;  %v1720_v39 = vld [vmem:[#allocation11 + $0x8] ss:$16 sps:$4 sm:$0xff]  }
 0x251   :  { %v367_v42 = vrot.slane %v366_v37, 2  ;;  %v382_v43 = vadd.f32 %v381_v38, %v379_v32 }
 0x252   :  { %v373_v44 = vrot.slane %v372_v40, 2  ;;  %v388_v45 = vadd.f32 %v387_v41, %v380_v35  ;;  %v1728_v41 = vld [vmem:[#allocation11 + $0x2c] ss:$16 sps:$4 sm:$0xff]  }
 0x253   :  { %v368_v46 = vadd.f32 %v367_v42, %v366_v37  ;;  %v383_v48 = vrot.slane %v382_v43, 2  ;;  %v1723_v42 = vld [vmem:[#allocation11 + $0x20] ss:$16 sps:$4 sm:$0xff]  }
 0x254   :  { %v374_v50 = vadd.f32 %v373_v44, %v372_v40  ;;  %v389_v51 = vrot.slane %v388_v45, 2  ;;  %v1725_v40 = vld [vmem:[#allocation11 + $0x24] ss:$16 sps:$4 sm:$0xff]  }
 0x255   :  { %v369_v52 = vrot.slane %v368_v46, 1  ;;  %v384_v53 = vadd.f32 %v383_v48, %v382_v43  ;;  %v1726_v43 = vld [vmem:[#allocation11 + $0x28] ss:$16 sps:$4 sm:$0xff]   ;;  %1204 = vmatprep.subr.bf16.mxu1 %v1725_v40  ;;  %v1731_v44 = vld [vmem:[#allocation11 + $0x44] ss:$16 sps:$4 sm:$0xff]  }
 0x256   :  { %v375_v54 = vrot.slane %v374_v50, 1  ;;  %v390_v55 = vadd.f32 %v389_v51, %v388_v45  ;;  %1205 = vmatpush1.bf16.msra.mxu1 %v1723_v42  ;;  %v1734_v45 = vld [vmem:[#allocation11 + $0x4c] ss:$16 sps:$4 sm:$0xff]   ;;  %v1732_v48 = vld [vmem:[#allocation11 + $0x48] ss:$16 sps:$4 sm:$0xff]  }
 0x257   :  { %v370_v56 = vadd.f32 %v369_v52, %v368_v46  ;;  %v385_v57 = vrot.slane %v384_v53, 1  ;;  %v1729_v46 = vld [vmem:[#allocation11 + $0x40] ss:$16 sps:$4 sm:$0xff]   ;;  %1206 = vmatprep.subr.bf16.mxu1 %v1731_v44  ;;  %v1740_v51 = vld [vmem:[#allocation11 + $0x6c] ss:$16 sps:$4 sm:$0xff]  }
 0x258   :  { %v391_v58 = vrot.slane %v390_v55, 1  ;;  %v376_v59 = vadd.f32 %v375_v54, %v374_v50  ;;  %v1737_v50 = vld [vmem:[#allocation11 + $0x64] ss:$16 sps:$4 sm:$0xff]   ;;  %v1735_v52 = vld [vmem:[#allocation11 + $0x60] ss:$16 sps:$4 sm:$0xff]  }
 0x259   :  { %v377_v60 = vmul.f32 0.125, %v370_v56  ;;  %v386_v61 = vadd.f32 %v385_v57, %v384_v53  ;;  %v1738_v53 = vld [vmem:[#allocation11 + $0x68] ss:$16 sps:$4 sm:$0xff]   ;;  %v1743_v54 = vld [vmem:[#allocation11 + $0x84] ss:$16 sps:$4 sm:$0xff]  }
 0x25a   :  { %v392_v62 = vadd.f32 %v391_v58, %v390_v55  ;;  %v378_v63 = vmul.f32 0.125, %v376_v59  ;;  %1207 = vmatpush1.bf16.msra.mxu1 %v1729_v46  ;;  %v1746_v55 = vld [vmem:[#allocation11 + $0x8c] ss:$16 sps:$4 sm:$0xff]   ;;  %v1741_v56 = vld [vmem:[#allocation11 + $0x80] ss:$16 sps:$4 sm:$0xff]  }
 0x25b   :  { %v393_v0 = vmul.f32 0.125, %v386_v61  ;;  %v395_v1 = vmul.f32 %v377_v60, %v377_v60  ;;  %1208 = vmatprep.subr.bf16.mxu1 %v1737_v50  ;;  %v1744_v57 = vld [vmem:[#allocation11 + $0x88] ss:$16 sps:$4 sm:$0xff]   ;;  %v1749_v58 = vld [vmem:[#allocation11 + $0xa4] ss:$16 sps:$4 sm:$0xff]  }
 0x25c   :  { %v394_v2 = vmul.f32 0.125, %v392_v62  ;;  %v396_v3 = vmul.f32 %v378_v63, %v378_v63  ;;  %v1752_v59 = vld [vmem:[#allocation11 + $0xac] ss:$16 sps:$4 sm:$0xff]   ;;  %v1750_v61 = vld [vmem:[#allocation11 + $0xa8] ss:$16 sps:$4 sm:$0xff]  }
 0x25d   :  { %v397_v4 = vsub.f32 %v393_v0, %v395_v1  ;;  %v1755_v62 = vld [vmem:[#allocation11 + $0xc4] ss:$16 sps:$4 sm:$0xff]   ;;  %v1753_v0 = vld [vmem:[#allocation11 + $0xc0] ss:$16 sps:$4 sm:$0xff]   ;;  %v1756_v1 = vld [vmem:[#allocation11 + $0xc8] ss:$16 sps:$4 sm:$0xff]  }
 0x25e   :  { %v398_v5 = vsub.f32 %v394_v2, %v396_v3  ;;  %1209 = vmatpush1.bf16.msra.mxu1 %v1735_v52  ;;  %v1761_v2 = vld [vmem:[#allocation11 + $0xe4] ss:$16 sps:$4 sm:$0xff]   ;;  %v1764_v3 = vld [vmem:[#allocation11 + $0xec] ss:$16 sps:$4 sm:$0xff]  }
 0x25f   :  { %v399_v6 = vadd.f32 1e-05, %v397_v4  ;;  %1210 = vmatprep.subr.bf16.mxu1 %v1743_v54  ;;  %v1759_v4 = vld [vmem:[#allocation11 + $0xe0] ss:$16 sps:$4 sm:$0xff]  }
 0x260   :  { %v400_v7 = vadd.f32 1e-05, %v398_v5  ;;  %v1762_v5 = vld [vmem:[#allocation11 + $0xe8] ss:$16 sps:$4 sm:$0xff]  }
 0x261   :  { %1815 = vrsqrt.f32 %v399_v6  ;;  %v1767_v6 = vld [vmem:[#allocation11 + $0x104] ss:$16 sps:$4 sm:$0xff]  }
 0x262   :  { %1817 = vrsqrt.f32 %v400_v7  ;;  %1211 = vmatpush1.bf16.msra.mxu1 %v1741_v56  ;;  %v1770_v7 = vld [vmem:[#allocation11 + $0x10c] ss:$16 sps:$4 sm:$0xff]  }
 0x263   :  { %1212 = vmatprep.subr.bf16.mxu1 %v1749_v58 }
 0x26b   :  { %v1816_v11 = vpop.eup %1815 }
 0x26c   :  { %v1818_v13 = vpop.eup %1817 }
 0x26d   :  { %v405_v14 = vcombine.low %v1816_v11, %v1818_v13  ;;  %v1776_v11 = vld [vmem:[#allocation11 + $0x12c] ss:$16 sps:$4 sm:$0xff]   ;;  %v1771_v13 = vld [vmem:[#allocation11 + $0x120] ss:$16 sps:$4 sm:$0xff]  }
 0x26f   :  { %v412_v15 = vrot.slane %v405_v14, %v2178_v12  ;;  %v1774_v14 = vld [vmem:[#allocation11 + $0x128] ss:$16 sps:$4 sm:$0xff]  }
 0x271   :  { %v419_v17 = vrot.slane %v412_v15, %v2178_v12  ;;  %v1779_v15 = vld [vmem:[#allocation11 + $0x144] ss:$16 sps:$4 sm:$0xff]  }
 0x273   :  { %v421_v19 = vmul.f32 %v419_v17, %v241_v16  ;;  %v1782_v16 = vld [vmem:[#allocation11 + $0x14c] ss:$16 sps:$4 sm:$0xff]   ;;  %v1777_v17 = vld [vmem:[#allocation11 + $0x140] ss:$16 sps:$4 sm:$0xff]  }
 0x275   :  { %v426_v20 = vrot.slane %v421_v19, %v2173_v49  ;;  %v430_v21 = vrot.slane %v421_v19, %v2186_v18  ;;  %v1780_v19 = vld [vmem:[#allocation11 + $0x148] ss:$16 sps:$4 sm:$0xff]  }
 0x277   :  { %v433_v22 = vmul.f32 %v426_v20, %v377_v60  ;;  %v434_v23 = vmul.f32 %v430_v21, %v378_v63  ;;  %v455_v24 = vmul.f32 %v430_v21, %v360_v33  ;;  %v454_v25 = vmul.f32 %v426_v20, %v358_v30  ;;  %v1747_v60 = vld [vmem:[#allocation11 + $0xa0] ss:$16 sps:$4 sm:$0xff]   ;;  %v1758_v63 = vld [vmem:[#allocation11 + $0xcc] ss:$16 sps:$4 sm:$0xff]   ;;  %v1785_v20 = vld [vmem:[#allocation11 + $0x164] ss:$16 sps:$4 sm:$0xff]  }
 0x278   :  { %1213 = vmatpush1.bf16.msra.mxu1 %v1747_v60  ;;  %v1788_v21 = vld [vmem:[#allocation11 + $0x16c] ss:$16 sps:$4 sm:$0xff]  }
 0x279   :  { %v437_v26 = vcombine.low %v433_v22, %v434_v23  ;;  %1214 = vmatprep.subr.bf16.mxu1 %v1755_v62  ;;  %v1783_v22 = vld [vmem:[#allocation11 + $0x160] ss:$16 sps:$4 sm:$0xff]   ;;  %v1786_v23 = vld [vmem:[#allocation11 + $0x168] ss:$16 sps:$4 sm:$0xff]  }
 0x27b   :  { %v444_v27 = vrot.slane %v437_v26, %v2178_v12  ;;  %v1789_v26 = vld [vmem:[#allocation11 + $0x180] ss:$16 sps:$4 sm:$0xff]  }
 0x27c   :  { %1215 = vmatpush1.bf16.msra.mxu1 %v1753_v0 }
 0x27d   :  { %v451_v29 = vrot.slane %v444_v27, %v2178_v12  ;;  %1216 = vmatprep.subr.bf16.mxu1 %v1761_v2  ;;  %v1792_v27 = vld [vmem:[#allocation11 + $0x188] ss:$16 sps:$4 sm:$0xff]  }
 0x27f   :  { %v453_v31 = vsub.f32 %v242_v28, %v451_v29  ;;  %v1797_v28 = vld [vmem:[#allocation11 + $0x1a4] ss:$16 sps:$4 sm:$0xff]   ;;  %v1800_v29 = vld [vmem:[#allocation11 + $0x1ac] ss:$16 sps:$4 sm:$0xff]  }
 0x280   :  { %1217 = vmatpush1.bf16.msra.mxu1 %v1759_v4 }
 0x281   :  { %v464_v32 = vrot.slane %v453_v31, %v2186_v18  ;;  %v460_v34 = vrot.slane %v453_v31, %v2173_v49  ;;  %1218 = vmatprep.subr.bf16.mxu1 %v1767_v6  ;;  %v1795_v31 = vld [vmem:[#allocation11 + $0x1a0] ss:$16 sps:$4 sm:$0xff]  }
 0x283   :  { %v468_v35 = vadd.f32 %v464_v32, %v455_v24  ;;  %v467_v36 = vadd.f32 %v460_v34, %v454_v25  ;;  %v1791_v24 = vld [vmem:[#allocation11 + $0x184] ss:$16 sps:$4 sm:$0xff]   ;;  %v1794_v25 = vld [vmem:[#allocation11 + $0x18c] ss:$16 sps:$4 sm:$0xff]   ;;  %v1798_v32 = vld [vmem:[#allocation11 + $0x1a8] ss:$16 sps:$4 sm:$0xff]  }
 0x284   :  { %1219 = vmatpush1.bf16.msra.mxu1 %v1765_v8  ;;  %v1803_v34 = vld [vmem:[#allocation11 + $0x1c4] ss:$16 sps:$4 sm:$0xff]  }
 0x285   :  { %v470_v37 = vmax.f32 %v468_v35, 0.0  ;;  %v469_v38 = vmax.f32 %v467_v36, 0.0  ;;  %1220 = vmatprep.subr.bf16.mxu1 %v1773_v10  ;;  %v1806_v35 = vld [vmem:[#allocation11 + $0x1cc] ss:$16 sps:$4 sm:$0xff]   ;;  %v1801_v36 = vld [vmem:[#allocation11 + $0x1c0] ss:$16 sps:$4 sm:$0xff]  }
 0x287   :  { %v506_v33 = vpack.c.bf16 %v470_v37, %v470_v37  ;;  %v505_v30 = vpack.c.bf16 %v469_v38, %v469_v38  ;;  %v1804_v37 = vld [vmem:[#allocation11 + $0x1c8] ss:$16 sps:$4 sm:$0xff]   ;;  %v1809_v38 = vld [vmem:[#allocation11 + $0x1e4] ss:$16 sps:$4 sm:$0xff]  }
 0x288   :  { %1221 = vmatpush1.bf16.msra.mxu1 %v1771_v13 }
 0x289   :  { %699 = vmatprep.mubr.bf16.mxu0 %v506_v33  ;;  %1222 = vmatprep.subr.bf16.mxu1 %v1779_v15  ;;  %v1812_v33 = vld [vmem:[#allocation11 + $0x1ec] ss:$16 sps:$4 sm:$0xff]  }
 0x28a   :  { %700 = vmatmul.mubr.bf16.vlgmr.msra.gmra.mrb[0].mxu0 %v505_v30  ;;  %v1807_v30 = vld [vmem:[#allocation11 + $0x1e0] ss:$16 sps:$4 sm:$0xff]  }
 0x28b   :  { %1244 = vmatpush1.bf16.msra.mxu0 %v1720_v39  ;;  %v1810_v39 = vld [vmem:[#allocation11 + $0x1e8] ss:$16 sps:$4 sm:$0xff]  }
 0x28c   :  { %1245 = vmatprep.subr.bf16.mxu0 %v1728_v41  ;;  %1223 = vmatpush1.bf16.msra.mxu1 %v1777_v17 }
 0x28d   :  { %1224 = vmatprep.subr.bf16.mxu1 %v1785_v20 }
 0x28f   :  { %1246 = vmatpush1.bf16.msra.mxu0 %v1726_v43 }
 0x290   :  { %1247 = vmatprep.subr.bf16.mxu0 %v1734_v45  ;;  %1225 = vmatpush1.bf16.msra.mxu1 %v1783_v22 }
 0x291   :  { %1226 = vmatprep.subr.bf16.mxu1 %v1791_v24  ;;  %v503_v24 = vld [vmem:[%s2277_s8] sm:$0x3] }
 0x293   :  { %1248 = vmatpush1.bf16.msra.mxu0 %v1732_v48 }
 0x294   :  { %1249 = vmatprep.subr.bf16.mxu0 %v1740_v51  ;;  %1227 = vmatpush1.bf16.msra.mxu1 %v1789_v26 }
 0x295   :  { %1228 = vmatprep.subr.bf16.mxu1 %v1797_v28 }
 0x297   :  { %1250 = vmatpush1.bf16.msra.mxu0 %v1738_v53 }
 0x298   :  { %1251 = vmatprep.subr.bf16.mxu0 %v1746_v55  ;;  %1229 = vmatpush1.bf16.msra.mxu1 %v1795_v31 }
 0x299   :  { %1230 = vmatprep.subr.bf16.mxu1 %v1803_v34 }
 0x29b   :  { %1252 = vmatpush1.bf16.msra.mxu0 %v1744_v57 }
 0x29c   :  { %1253 = vmatprep.subr.bf16.mxu0 %v1752_v59  ;;  %1231 = vmatpush1.bf16.msra.mxu1 %v1801_v36 }
 0x29d   :  { %1232 = vmatprep.subr.bf16.mxu1 %v1809_v38 }
 0x29f   :  { %1254 = vmatpush1.bf16.msra.mxu0 %v1750_v61 }
 0x2a0   :  { %1255 = vmatprep.subr.bf16.mxu0 %v1758_v63  ;;  %1233 = vmatpush1.bf16.msra.mxu1 %v1807_v30 }
 0x2a3   :  { %1256 = vmatpush1.bf16.msra.mxu0 %v1756_v1 }
 0x2a4   :  { %1257 = vmatprep.subr.bf16.mxu0 %v1764_v3 }
 0x2a7   :  { %1258 = vmatpush1.bf16.msra.mxu0 %v1762_v5 }
 0x2a8   :  { %1259 = vmatprep.subr.bf16.mxu0 %v1770_v7 }
 0x2ab   :  { %1260 = vmatpush1.bf16.msra.mxu0 %v1768_v9 }
 0x2ac   :  { %1261 = vmatprep.subr.bf16.mxu0 %v1776_v11 }
 0x2af   :  { %1262 = vmatpush1.bf16.msra.mxu0 %v1774_v14 }
 0x2b0   :  { %1263 = vmatprep.subr.bf16.mxu0 %v1782_v16 }
 0x2b3   :  { %1264 = vmatpush1.bf16.msra.mxu0 %v1780_v19 }
 0x2b4   :  { %1265 = vmatprep.subr.bf16.mxu0 %v1788_v21 }
 0x2b7   :  { %1266 = vmatpush1.bf16.msra.mxu0 %v1786_v23 }
 0x2b8   :  { %1267 = vmatprep.subr.bf16.mxu0 %v1794_v25 }
 0x2bb   :  { %1268 = vmatpush1.bf16.msra.mxu0 %v1792_v27 }
 0x2bc   :  { %1269 = vmatprep.subr.bf16.mxu0 %v1800_v29 }
 0x2bf   :  { %1270 = vmatpush1.bf16.msra.mxu0 %v1798_v32 }
 0x2c0   :  { %1271 = vmatprep.subr.bf16.mxu0 %v1806_v35 }
 0x2c3   :  { %1272 = vmatpush1.bf16.msra.mxu0 %v1804_v37  ;;  %v504_v37 = vld [vmem:[%s2278_s9] sm:$0x3] }
 0x2c4   :  { %1273 = vmatprep.subr.bf16.mxu0 %v1812_v33 }
 0x2c7   :  { %1274 = vmatpush1.bf16.msra.mxu0 %v1810_v39 }
 0x35d   :  { %v701_v40 = vpop.f32.mrb[0].mxu0 }
 0x35e   :  { %v708_v41 = vrot.slane %v701_v40, 4  ;;  %v722_v42 = vmul.f32 %v701_v40, %v701_v40  ;;  %v703_v43 = vpop.f32.mrb[1].mxu0 }
 0x35f   :  { %v714_v44 = vrot.slane %v703_v43, 4  ;;  %v723_v45 = vmul.f32 %v703_v43, %v703_v43  ;;  %v705_v46 = vpop.f32.mrb[2].mxu0 }
 0x360   :  { %v709_v48 = vadd.f32 %v708_v41, %v701_v40  ;;  %v724_v50 = vrot.slane %v722_v42, 4  ;;  %v706_v51 = vpop.f32.mrb[3].mxu0 }
 0x361   :  { %v715_v52 = vadd.f32 %v714_v44, %v703_v43  ;;  %v730_v53 = vrot.slane %v723_v45, 4 }
 0x362   :  { %v710_v54 = vrot.slane %v709_v48, 2  ;;  %v725_v55 = vadd.f32 %v724_v50, %v722_v42 }
 0x363   :  { %v716_v56 = vrot.slane %v715_v52, 2  ;;  %v731_v57 = vadd.f32 %v730_v53, %v723_v45 }
 0x364   :  { %v711_v58 = vadd.f32 %v710_v54, %v709_v48  ;;  %v726_v59 = vrot.slane %v725_v55, 2 }
 0x365   :  { %v717_v60 = vadd.f32 %v716_v56, %v715_v52  ;;  %v732_v61 = vrot.slane %v731_v57, 2 }
 0x366   :  { %v712_v62 = vrot.slane %v711_v58, 1  ;;  %v727_v63 = vadd.f32 %v726_v59, %v725_v55 }
 0x367   :  { %v718_v0 = vrot.slane %v717_v60, 1  ;;  %v733_v1 = vadd.f32 %v732_v61, %v731_v57 }
 0x368   :  { %v713_v2 = vadd.f32 %v712_v62, %v711_v58  ;;  %v728_v3 = vrot.slane %v727_v63, 1 }
 0x369   :  { %v719_v4 = vadd.f32 %v718_v0, %v717_v60  ;;  %v734_v5 = vrot.slane %v733_v1, 1 }
 0x36a   :  { %v720_v6 = vmul.f32 0.125, %v713_v2  ;;  %v729_v7 = vadd.f32 %v728_v3, %v727_v63 }
 0x36b   :  { %v721_v8 = vmul.f32 0.125, %v719_v4  ;;  %v735_v9 = vadd.f32 %v734_v5, %v733_v1 }
 0x36c   :  { %v736_v10 = vmul.f32 0.125, %v729_v7  ;;  %v738_v11 = vmul.f32 %v720_v6, %v720_v6 }
 0x36d   :  { %v737_v13 = vmul.f32 0.125, %v735_v9  ;;  %v739_v14 = vmul.f32 %v721_v8, %v721_v8 }
 0x36e   :  { %v740_v15 = vsub.f32 %v736_v10, %v738_v11 }
 0x36f   :  { %v741_v16 = vsub.f32 %v737_v13, %v739_v14 }
 0x370   :  { %v742_v17 = vadd.f32 1e-05, %v740_v15 }
 0x371   :  { %v743_v19 = vadd.f32 1e-05, %v741_v16 }
 0x372   :  { %1819 = vrsqrt.f32 %v742_v17 }
 0x373   :  { %1821 = vrsqrt.f32 %v743_v19 }
 0x37c   :  { %v1820_v20 = vpop.eup %1819 }
 0x37d   :  { %v1822_v21 = vpop.eup %1821 }
 0x37e   :  { %v748_v22 = vcombine.low %v1820_v20, %v1822_v21 }
 0x380   :  { %v755_v23 = vrot.slane %v748_v22, %v2178_v12 }
 0x382   :  { %v762_v25 = vrot.slane %v755_v23, %v2178_v12 }
 0x384   :  { %v764_v26 = vmul.f32 %v762_v25, %v503_v24 }
 0x386   :  { %v769_v27 = vrot.slane %v764_v26, %v2173_v49  ;;  %v773_v28 = vrot.slane %v764_v26, %v2186_v18 }
 0x388   :  { %v776_v29 = vmul.f32 %v769_v27, %v720_v6  ;;  %v777_v31 = vmul.f32 %v773_v28, %v721_v8  ;;  %v798_v32 = vmul.f32 %v773_v28, %v703_v43  ;;  %v797_v34 = vmul.f32 %v769_v27, %v701_v40 }
 0x38a   :  { %v780_v35 = vcombine.low %v776_v29, %v777_v31 }
 0x38c   :  { %v787_v36 = vrot.slane %v780_v35, %v2178_v12 }
 0x38e   :  { %v794_v38 = vrot.slane %v787_v36, %v2178_v12 }
 0x390   :  { %v796_v33 = vsub.f32 %v504_v37, %v794_v38 }
 0x392   :  { %v807_v30 = vrot.slane %v796_v33, %v2186_v18  ;;  %v803_v39 = vrot.slane %v796_v33, %v2173_v49 }
 0x394   :  { %v811_v41 = vadd.f32 %v807_v30, %v798_v32  ;;  %v810_v42 = vadd.f32 %v803_v39, %v797_v34 }
 0x396   :  { %v813_v44 = vmax.f32 %v811_v41, 0.0  ;;  %v812_v45 = vmax.f32 %v810_v42, 0.0 }
 0x398   :  { %v881_v43 = vpack.c.bf16 %v813_v44, %v813_v44  ;;  %v880_v40 = vpack.c.bf16 %v812_v45, %v812_v45 }
 0x39a   :  { %1234 = vmatprep.mubr.bf16.mxu1 %v881_v43  ;;  %1275 = vmatprep.mubr.bf16.mxu0 %v881_v43 }
 0x39b   :  { %1235 = vmatmul.mubr.bf16.vlgmr.msra.gmra.mrb[8].mxu1 %v880_v40  ;;  %1276 = vmatmul.mubr.bf16.vlgmr.msra.gmra.mrb[4].mxu0 %v880_v40 }
 0x46e   :  { %v2211_v46 = vpop.f32.mrb[8].mxu1  ;;  %v2213_v48 = vpop.f32.mrb[4].mxu0 }
 0x46f   :  { %v1284_v50 = vrot.slane %v2211_v46, 4  ;;  %v1312_v51 = vmul.f32 %v2211_v46, %v2211_v46  ;;  %v1296_v52 = vrot.slane %v2213_v48, 4  ;;  %v1314_v53 = vmul.f32 %v2213_v48, %v2213_v48  ;;  %v2221_v54 = vpop.f32.mrb[9].mxu1  ;;  %v2223_v55 = vpop.f32.mrb[5].mxu0 }
 0x470   :  { %v1290_v56 = vrot.slane %v2221_v54, 4  ;;  %v1313_v57 = vmul.f32 %v2221_v54, %v2221_v54  ;;  %v1302_v58 = vrot.slane %v2223_v55, 4  ;;  %v1315_v59 = vmul.f32 %v2223_v55, %v2223_v55  ;;  %v1240_v60 = vpop.f32.mrb[10].mxu1  ;;  %v1281_v61 = vpop.f32.mrb[6].mxu0 }
 0x471   :  { %v1285_v62 = vadd.f32 %v1284_v50, %v2211_v46  ;;  %v1316_v63 = vrot.slane %v1312_v51, 4  ;;  %v1297_v0 = vadd.f32 %v1296_v52, %v2213_v48  ;;  %v1328_v1 = vrot.slane %v1314_v53, 4  ;;  %v1241_v2 = vpop.f32.mrb[11].mxu1  ;;  %v1282_v3 = vpop.f32.mrb[7].mxu0 }
 0x472   :  { %v1291_v4 = vadd.f32 %v1290_v56, %v2221_v54  ;;  %v1322_v5 = vrot.slane %v1313_v57, 4  ;;  %v1303_v6 = vadd.f32 %v1302_v58, %v2223_v55  ;;  %v1334_v7 = vrot.slane %v1315_v59, 4 }
 0x473   :  { %v1286_v8 = vrot.slane %v1285_v62, 2  ;;  %v1317_v9 = vadd.f32 %v1316_v63, %v1312_v51  ;;  %v1298_v10 = vrot.slane %v1297_v0, 2  ;;  %v1329_v11 = vadd.f32 %v1328_v1, %v1314_v53 }
 0x474   :  { %v1292_v13 = vrot.slane %v1291_v4, 2  ;;  %v1323_v14 = vadd.f32 %v1322_v5, %v1313_v57  ;;  %v1304_v15 = vrot.slane %v1303_v6, 2  ;;  %v1335_v16 = vadd.f32 %v1334_v7, %v1315_v59 }
 0x475   :  { %v1287_v17 = vadd.f32 %v1286_v8, %v1285_v62  ;;  %v1318_v19 = vrot.slane %v1317_v9, 2  ;;  %v1299_v20 = vadd.f32 %v1298_v10, %v1297_v0  ;;  %v1330_v21 = vrot.slane %v1329_v11, 2 }
 0x476   :  { %v1293_v22 = vadd.f32 %v1292_v13, %v1291_v4  ;;  %v1324_v23 = vrot.slane %v1323_v14, 2  ;;  %v1305_v24 = vadd.f32 %v1304_v15, %v1303_v6  ;;  %v1336_v25 = vrot.slane %v1335_v16, 2 }
 0x477   :  { %v1288_v26 = vrot.slane %v1287_v17, 1  ;;  %v1319_v27 = vadd.f32 %v1318_v19, %v1317_v9  ;;  %v1300_v28 = vrot.slane %v1299_v20, 1  ;;  %v1331_v29 = vadd.f32 %v1330_v21, %v1329_v11  ;;  %v878_v19 = vld [vmem:[%s2280_s11] sm:$0xf] }
 0x478   :  { %v1294_v31 = vrot.slane %v1293_v22, 1  ;;  %v1325_v32 = vadd.f32 %v1324_v23, %v1323_v14  ;;  %v1306_v34 = vrot.slane %v1305_v24, 1  ;;  %v1337_v35 = vadd.f32 %v1336_v25, %v1335_v16 }
 0x479   :  { %v1289_v36 = vadd.f32 %v1288_v26, %v1287_v17  ;;  %v1320_v37 = vrot.slane %v1319_v27, 1  ;;  %v1301_v38 = vadd.f32 %v1300_v28, %v1299_v20  ;;  %v1332_v33 = vrot.slane %v1331_v29, 1 }
 0x47a   :  { %v1295_v30 = vadd.f32 %v1294_v31, %v1293_v22  ;;  %v1326_v39 = vrot.slane %v1325_v32, 1  ;;  %v1307_v41 = vadd.f32 %v1306_v34, %v1305_v24  ;;  %v1338_v42 = vrot.slane %v1337_v35, 1 }
 0x47b   :  { %v1308_v44 = vmul.f32 0.125, %v1289_v36  ;;  %v1321_v45 = vadd.f32 %v1320_v37, %v1319_v27  ;;  %v1310_v43 = vmul.f32 0.125, %v1301_v38  ;;  %v1333_v40 = vadd.f32 %v1332_v33, %v1331_v29 }
 0x47c   :  { %v1309_v50 = vmul.f32 0.125, %v1295_v30  ;;  %v1327_v51 = vadd.f32 %v1326_v39, %v1325_v32  ;;  %v1311_v52 = vmul.f32 0.125, %v1307_v41  ;;  %v1339_v53 = vadd.f32 %v1338_v42, %v1337_v35  ;;  %v879_v41 = vld [vmem:[%s2281_s12] sm:$0xf]  ;;  %s1963_s12 = scalar_lea.vmem %s1489_s21, 512 }
 0x47d   :  { %v1340_v56 = vmul.f32 0.125, %v1321_v45  ;;  %v1344_v57 = vmul.f32 %v1308_v44, %v1308_v44  ;;  %v1342_v58 = vmul.f32 0.125, %v1333_v40  ;;  %v1346_v59 = vmul.f32 %v1310_v43, %v1310_v43  ;;  %p1964_p6 = scmp.ne.s32.totalorder %s1489_s21, %s1963_s12  ;;  %p1969_p8 = scmp.lt.s32.totalorder %s1963_s12, %s1963_s12 }
 0x47e   :  { %v1341_v60 = vmul.f32 0.125, %v1327_v51  ;;  %v1345_v61 = vmul.f32 %v1309_v50, %v1309_v50  ;;  %v1343_v62 = vmul.f32 0.125, %v1339_v53  ;;  %v1347_v63 = vmul.f32 %v1311_v52, %v1311_v52 }
 0x47f   :  { %v1348_v0 = vsub.f32 %v1340_v56, %v1344_v57  ;;  %v1350_v1 = vsub.f32 %v1342_v58, %v1346_v59  ;;  %v1401_v21 = vsub.s32 2, %v2167_v47  ;;  %v1405_v22 = vsub.s32 3, %v2167_v47  ;;  %p1970_p9 = por %p1969_p8, %p1968_p7 }
 0x480   :  { %v1349_v2 = vsub.f32 %v1341_v60, %v1345_v61  ;;  %v1351_v3 = vsub.f32 %v1343_v62, %v1347_v63 }
 0x481   :  { %v1352_v4 = vadd.f32 1e-05, %v1348_v0  ;;  %v1354_v5 = vadd.f32 1e-05, %v1350_v1  ;;  %p1971_p10 = pnand %p1970_p9, %p1964_p6 }
 0x482   :  { %v1353_v6 = vadd.f32 1e-05, %v1349_v2  ;;  %v1355_v7 = vadd.f32 1e-05, %v1351_v3 }
 0x483   :  { %1823 = vrsqrt.f32 %v1352_v4 }
 0x484   :  { %1825 = vrsqrt.f32 %v1354_v5 }
 0x485   :  { %1827 = vrsqrt.f32 %v1353_v6 }
 0x486   :  { %1829 = vrsqrt.f32 %v1355_v7 }
 0x48d   :  { %v1824_v8 = vpop.eup %1823 }
 0x48e   :  { %v1826_v9 = vpop.eup %1825 }
 0x48f   :  { %v1828_v10 = vpop.eup %1827 }
 0x490   :  { %v1830_v11 = vpop.eup %1829  ;;  %v1364_v13 = vcombine.low %v1824_v8, %v1828_v10 }
 0x491   :  { %v1365_v14 = vcombine.low %v1826_v9, %v1830_v11 }
 0x492   :  { %v1372_v15 = vrot.slane %v1364_v13, %v2178_v12 }
 0x493   :  { %v1379_v16 = vrot.slane %v1365_v14, %v2178_v12 }
 0x495   :  { %v1380_v17 = vcombine.low %v1372_v15, %v1379_v16 }
 0x497   :  { %v1387_v20 = vrot.slane %v1380_v17, %v2178_v12 }
 0x499   :  { %v1389_v23 = vmul.f32 %v1387_v20, %v878_v19 }
 0x49b   :  { %v1394_v24 = vrot.slane %v1389_v23, %v2173_v49  ;;  %v1398_v25 = vrot.slane %v1389_v23, %v2186_v18  ;;  %v1402_v26 = vrot.slane %v1389_v23, %v1401_v21  ;;  %v1406_v27 = vrot.slane %v1389_v23, %v1405_v22 }
 0x49d   :  { %v1411_v28 = vmul.f32 %v1394_v24, %v1308_v44  ;;  %v1412_v29 = vmul.f32 %v1398_v25, %v1309_v50  ;;  %v1413_v31 = vmul.f32 %v1402_v26, %v1310_v43  ;;  %v1414_v32 = vmul.f32 %v1406_v27, %v1311_v52 }
 0x49e   :  { %v1448_v34 = vmul.f32 %v1406_v27, %v2223_v55  ;;  %v1445_v35 = vmul.f32 %v1394_v24, %v2211_v46  ;;  %v1446_v36 = vmul.f32 %v1398_v25, %v2221_v54  ;;  %v1447_v37 = vmul.f32 %v1402_v26, %v2213_v48 }
 0x49f   :  { %v1419_v47 = vcombine.low %v1411_v28, %v1412_v29  ;;  %v1420_v38 = vcombine.low %v1413_v31, %v1414_v32 }
 0x4a1   :  { %v1427_v33 = vrot.slane %v1419_v47, %v2178_v12  ;;  %v1434_v30 = vrot.slane %v1420_v38, %v2178_v12 }
 0x4a3   :  { %v1435_v39 = vcombine.low %v1427_v33, %v1434_v30 }
 0x4a5   :  { %v1442_v42 = vrot.slane %v1435_v39, %v2178_v12 }
 0x4a7   :  { %v1444_v55 = vsub.f32 %v879_v41, %v1442_v42 }
 0x4a9   :  { %v1465_v44 = vrot.slane %v1444_v55, %v1405_v22  ;;  %v1453_v46 = vrot.slane %v1444_v55, %v2173_v49  ;;  %v1457_v54 = vrot.slane %v1444_v55, %v2186_v18  ;;  %v1461_v48 = vrot.slane %v1444_v55, %v1401_v21 }
 0x4ab   :  { %v1473_v45 = vadd.f32 %v1465_v44, %v1448_v34  ;;  %v1470_v43 = vadd.f32 %v1453_v46, %v1445_v35  ;;  %v1471_v40 = vadd.f32 %v1457_v54, %v1446_v36  ;;  %v1472_v50 = vadd.f32 %v1461_v48, %v1447_v37 }
 0x4ad   :  { %v1477_v51 = vmax.f32 %v1473_v45, 0.0  ;;  %v1474_v52 = vmax.f32 %v1470_v43, 0.0  ;;  %v1475_v53 = vmax.f32 %v1471_v40, 0.0  ;;  %v1476_v56 = vmax.f32 %v1472_v50, 0.0 }
 0x4af   :  { %1481 = vst [vmem:[#allocation13 + $0x18] sm:$0xff] %v1477_v51  ;;  %1478 = vst [vmem:[#allocation13] sm:$0xff] %v1474_v52 }
 0x4b0   :  { %1479 = vst [vmem:[#allocation13 + $0x8] sm:$0xff] %v1475_v53  ;;  %1480 = vst [vmem:[#allocation13 + $0x10] sm:$0xff] %v1476_v56 }
 0x4b1   :  { %1974 = shalt.err (!%p1971_p10)
}
 0x4b2   :  { %s1975_s25 = scalar_lea.hbm %s2282_s13, 512 }
 0x4b3   :  { %p1976_p11 = scmp.ne.s32.totalorder %s2282_s13, %s1975_s25  ;;  %p1979_p12 = scmp.lt.u32.totalorder %s1975_s25, %s2282_s13 }
 0x4b5   :  { %p1981_p13 = pnand %p1979_p12, %p1976_p11 }
 0x4b7   :  { %1984 = shalt.err (!%p1981_p13)
}
 0x4b8   :  { %1491 = dma.vmem_to_hbm [thread:$0]  %s1489_s21, 512, %s2282_s13, [#allocation4]  }
 0x4b9   :  { %1993 = dma.done.wait [#allocation4], 512  }
 0x4ba   :  { %1994 = vsyncadd [#allocation4], 4294966784 }
 0x4bb   :  { %1495 = vsyncpa [#allocation3], 1 }
 0x4bc   :  { %1496 = vsyncpa [#allocation6], 1 }
 0x4bd   :  { %1497 = vsyncpa [#allocation9], 1 }
 0x4be   :  { %1498 = vsyncpa [#allocation12], 1 }
 0x4bf   :  { %1499 = vsyncpa [#allocation4], 1 }

</bundles_post_ra>
